<compile_context>
chip_gen: v7x
topology: tpu7x:2x2x1
jax: 0.10.0
libtpu: 0.0.40
codegen_flags: <defaults>
</compile_context>

<pallas_src>
import jax
import jax.numpy as jnp
from jax.experimental import pallas as pl
from jax.experimental.pallas import tpu as pltpu


_LANE_CANDIDATES = (8192, 4096, 2048, 1024, 512, 256, 128)


def _sublane_multiple(dtype) -> int:
    # Sublane granularity of the (sublane, 128) tiling constraint:
    # 8 for 32-bit, 16 for 16-bit, 32 for 8-bit dtypes.
    bits = jnp.dtype(dtype).itemsize * 8
    return max(8, 256 // bits)


def _chip_generation() -> int:
    """Best-effort TPU generation detection (5, 6, 7). Defaults to 6."""
    try:
        kind = jax.devices()[0].device_kind.lower()
    except Exception:
        return 6
    for gen in (7, 6, 5, 4):
        if f"v{gen}" in kind or f"{gen}x" in kind or f"{gen}e" in kind or f"{gen}p" in kind:
            return gen
    return 6


def _make_sigmoid_kernel(compute_dtype):
    def kernel(x_ref, o_ref):
        # sigmoid(x) = 0.5 * tanh(0.5 * x) + 0.5
        # tanh lowers to the EUP slot (otherwise idle here), so there is no
        # VALU divide/Newton-Raphson chain -> kernel stays purely DMA-bound.
        x = x_ref[...].astype(compute_dtype)
        o_ref[...] = (0.5 * jnp.tanh(0.5 * x) + 0.5).astype(o_ref.dtype)

    return kernel


def _sigmoid_pallas_2d(x2d, tile_r, compute_dtype, vmem_limit):
    rows, lanes = x2d.shape
    return pl.pallas_call(
        _make_sigmoid_kernel(compute_dtype),
        out_shape=jax.ShapeDtypeStruct((rows, lanes), x2d.dtype),
        grid_spec=pltpu.PrefetchScalarGridSpec(
            num_scalar_prefetch=0,
            grid=(pl.cdiv(rows, tile_r),),
            in_specs=[pl.BlockSpec((tile_r, lanes), lambda i: (i, 0))],
            out_specs=pl.BlockSpec((tile_r, lanes), lambda i: (i, 0)),
        ),
        compiler_params=pltpu.CompilerParams(
            dimension_semantics=("parallel",),
            vmem_limit_bytes=vmem_limit,
        ),
    )(x2d)


def tudui_forward(x: jax.Array) -> jax.Array:
    """Elementwise sigmoid on an arbitrary-shape tensor via a Pallas TPU kernel."""
    orig_shape = x.shape

    # PyTorch's Sigmoid produces a floating result; keep bf16/f16/f32 I/O in
    # their native dtype (halves HBM traffic vs forcing f32), promote anything
    # else (ints, f64) to f32.
    if x.dtype not in (jnp.float32, jnp.bfloat16, jnp.float16):
        x = x.astype(jnp.float32)
    io_dtype = x.dtype
    itemsize = jnp.dtype(io_dtype).itemsize

    gen = _chip_generation()
    # Generation-gated tiling: v7x has 64 MiB physical / 32 MiB scoped VMEM and
    # 2 TensorCores per chip; v5e/v6e have 128 MiB VMEM and 1 TC.
    if gen >= 7:
        tile_bytes = 2 * 1024 * 1024
        vmem_limit = 32 * 1024 * 1024
    else:
        tile_bytes = 4 * 1024 * 1024
        vmem_limit = 64 * 1024 * 1024

    # bf16 math is native on v6e/v7x VPU/EUP (packed vregs -> half the bundles);
    # v5e has no bf16 VALU/EUP, so widen to f32 there. f16/f32 compute in f32.
    if io_dtype == jnp.bfloat16 and gen >= 6:
        compute_dtype = jnp.bfloat16
    else:
        compute_dtype = jnp.float32

    total = x.size
    sub = _sublane_multiple(io_dtype)
    x_flat = x.reshape(-1)

    # Lane width: widest multiple of 128 that divides the element count exactly
    # (no tail at all); otherwise the widest that leaves a non-empty aligned
    # prefix for the kernel.
    lanes = None
    for cand in _LANE_CANDIDATES:
        if total % (cand * sub) == 0:
            lanes = cand
            break
    if lanes is None:
        for cand in _LANE_CANDIDATES:
            if total >= cand * sub:
                lanes = cand
                break

    if lanes is None:
        # Tiny ragged tensor (< one (sub, 128) tile): a kernel launch plus
        # padding copies would cost more than it saves.
        return jax.nn.sigmoid(x_flat).reshape(orig_shape)

    head = (total // (lanes * sub)) * (lanes * sub)
    rows = head // lanes  # multiple of `sub`

    bytes_per_row = lanes * itemsize
    target_rows = max(sub, (tile_bytes // bytes_per_row) // sub * sub)
    tile_r = min(rows, target_rows)
    if gen >= 7 and rows >= 2 * sub:
        # Guarantee >= 2 grid blocks so both v7x TensorCores stream HBM.
        half_rows = max(sub, (-(-rows // 2)) // sub * sub)
        tile_r = min(tile_r, half_rows)

    head_out = _sigmoid_pallas_2d(
        x_flat[:head].reshape(rows, lanes), tile_r, compute_dtype, vmem_limit
    ).reshape(-1)

    if head == total:
        out_flat = head_out
    else:
        # Sub-tile tail (< lanes*sub elements): plain XLA sigmoid, avoiding the
        # old pad + slice path that doubled HBM traffic on ragged sizes.
        tail_out = jax.nn.sigmoid(
            x_flat[head:].astype(compute_dtype)
        ).astype(io_dtype)
        out_flat = jnp.concatenate([head_out, tail_out])

    return out_flat.reshape(orig_shape)


if __name__ == "__main__":
    key = jax.random.PRNGKey(0)
    # Small NCHW input consistent with the module's conv-style usage.
    x = jax.random.normal(key, (2, 4, 16, 16), dtype=jnp.float32)

    y = tudui_forward(x)
    jax.block_until_ready(y)

    # Correctness check against plain JAX sigmoid (tanh-form sigmoid is the
    # same algorithm XLA's logistic uses; tolerance left slightly loose for
    # ulp-level differences in the hardware tanh).
    y_ref = jax.nn.sigmoid(x)
    assert y.shape == x.shape and y.dtype == x.dtype
    assert jnp.max(jnp.abs(y - y_ref)) < 1e-5

    print("KERNEL_OK")
</pallas_src>

<mosaic_0001>
module attributes {stable_mosaic.version = 11 : i64} {
  func.func @kernel(%arg0: i32, %arg1: memref<8x256xf32, #tpu.memory_space<vmem>>, %arg2: memref<8x256xf32, #tpu.memory_space<vmem>>) attributes {dimension_semantics = [#tpu.dimension_semantics<parallel>], iteration_bounds = array<i64: 1>, scalar_prefetch = 0 : i64, scratch_operands = 0 : i64, tpu.core_type = #tpu.core_type<tc>, window_params = [{transform_indices = @transform_0, window_bounds = array<i64: 8, 256>}, {transform_indices = @transform_1, window_bounds = array<i64: 8, 256>}]} {
    %c0 = arith.constant 0 : index
    %c0_0 = arith.constant 0 : index
    %0 = vector.load %arg1[%c0, %c0_0] : memref<8x256xf32, #tpu.memory_space<vmem>>, vector<8x256xf32>
    %cst = arith.constant 5.000000e-01 : f32
    %1 = vector.broadcast %cst : f32 to vector<8x256xf32>
    %2 = arith.mulf %1, %0 : vector<8x256xf32>
    %3 = math.tanh %2 : vector<8x256xf32>
    %cst_1 = arith.constant 5.000000e-01 : f32
    %4 = vector.broadcast %cst_1 : f32 to vector<8x256xf32>
    %5 = arith.mulf %4, %3 : vector<8x256xf32>
    %cst_2 = arith.constant 5.000000e-01 : f32
    %6 = vector.broadcast %cst_2 : f32 to vector<8x256xf32>
    %7 = arith.addf %5, %6 : vector<8x256xf32>
    %c0_3 = arith.constant 0 : index
    %c0_4 = arith.constant 0 : index
    %8 = vector.load %arg2[%c0_3, %c0_4] : memref<8x256xf32, #tpu.memory_space<vmem>>, vector<8x256xf32>
    tpu.vector_store %arg2[%c0_3, %c0_4], %7 {strides = array<i32>} : memref<8x256xf32, #tpu.memory_space<vmem>>, vector<8x256xf32>,
    return
  }
  func.func @transform_0(%arg0: i32) -> (i32, i32) {
    %c0_i32 = arith.constant 0 : i32
    %c0_i32_0 = arith.constant 0 : i32
    return %arg0, %c0_i32 : i32, i32
  }
  func.func @transform_1(%arg0: i32) -> (i32, i32) {
    %c0_i32 = arith.constant 0 : i32
    %c0_i32_0 = arith.constant 0 : i32
    return %arg0, %c0_i32 : i32, i32
  }
}

</mosaic_0001>

<bundles_post_ra>
// kernel: tpu_custom_call.1
= control target key start
LH: loop header
LB: loop body
LE: loop exit
PB: predicated region body
PF: predicated region fallthrough
CT: control target
= control target key end

     0   :  { %6 = vsyncpa [#allocation3], 0  ;;  %s138_s0 = inlined_call_operand.hbm [shape: f32[8,256], index: 0, kind: input, shape index: {}]   ;;  %s139_s1 = inlined_call_operand.hbm [shape: f32[8,256], index: 1, kind: output, shape index: {}]  }
   0x1   :  { %7 = vsyncpa [#allocation4], 0  ;;  %s102_s6 = smov [#allocation2]   ;;  %s54_s10 = scalar_lea.hbm %s138_s0, 256 }
   0x2   :  { %s14_s7 = sshll.u32 %s102_s6, 4  ;;  %p55_p0 = scmp.ne.s32.totalorder %s138_s0, %s54_s10  ;;  %s15_s7 = int_to_ptr.vmem [resolvable:$true] %s14_s7 }
   0x3   :  { %p58_p1 = scmp.lt.u32.totalorder %s54_s10, %s138_s0 }
   0x5   :  { %p60_p2 = pnand %p58_p1, %p55_p0 }
   0x7   :  { %63 = shalt.err (!%p60_p2)
}
   0x8   :  { %s64_s15 = scalar_lea.vmem %s15_s7, 256  ;;  %p69_p4 = scmp.lt.s32.totalorder %s15_s7, %s15_s7 }
   0x9   :  { %p65_p3 = scmp.ne.s32.totalorder %s15_s7, %s64_s15  ;;  %p70_p5 = scmp.lt.s32.totalorder %s64_s15, %s64_s15 }
   0xb   :  { %p71_p6 = por %p70_p5, %p69_p4 }
   0xd   :  { %p72_p7 = pnand %p71_p6, %p65_p3 }
   0xf   :  { %75 = shalt.err (!%p72_p7)
}
  0x10   :  { %17 = dma.hbm_to_vmem [thread:$0]  %s138_s0, 256, %s15_s7, [#allocation3]  }
  0x11   :  { %98 = dma.done.wait [#allocation3], 256  }
  0x12   :  { %99 = vsyncadd [#allocation3], 4294967040  ;;  %v21_v0 = vld [vmem:[#allocation2] sm:$0xff]  ;;  %v22_v1 = vld [vmem:[#allocation2 + $0x8] sm:$0xff]  ;;  %s103_s18 = smov [#allocation5]  }
  0x13   :  { %v23_v2 = vmul.f32 0.5, %v21_v0  ;;  %v24_v3 = vmul.f32 0.5, %v22_v1  ;;  %s39_s19 = sshll.u32 %s103_s18, 4  ;;  %s40_s19 = int_to_ptr.vmem [resolvable:$true] %s39_s19 }
  0x14   :  { %s76_s0 = scalar_lea.vmem %s40_s19, 256  ;;  %p81_p9 = scmp.lt.s32.totalorder %s40_s19, %s40_s19 }
  0x15   :  { %50 = vtanh.f32 %v23_v2  ;;  %p77_p8 = scmp.ne.s32.totalorder %s40_s19, %s76_s0  ;;  %p82_p10 = scmp.lt.s32.totalorder %s76_s0, %s76_s0 }
  0x16   :  { %52 = vtanh.f32 %v24_v3 }
  0x17   :  { %p83_p11 = por %p82_p10, %p81_p9 }
  0x19   :  { %p84_p12 = pnand %p83_p11, %p77_p8 }
  0x1f   :  { %v51_v4 = vpop.eup %50 }
  0x20   :  { %v53_v5 = vpop.eup %52  ;;  %v27_v6 = vmul.f32 0.5, %v51_v4 }
  0x21   :  { %v28_v7 = vmul.f32 0.5, %v53_v5 }
  0x22   :  { %v29_v8 = vadd.f32 0.5, %v27_v6 }
  0x23   :  { %v30_v9 = vadd.f32 0.5, %v28_v7 }
  0x24   :  { %31 = vst [vmem:[#allocation5] sm:$0xff] %v29_v8 }
  0x25   :  { %32 = vst [vmem:[#allocation5 + $0x8] sm:$0xff] %v30_v9 }
  0x26   :  { %87 = shalt.err (!%p84_p12)
}
  0x27   :  { %s88_s22 = scalar_lea.hbm %s139_s1, 256 }
  0x28   :  { %p89_p13 = scmp.ne.s32.totalorder %s139_s1, %s88_s22  ;;  %p92_p0 = scmp.lt.u32.totalorder %s88_s22, %s139_s1 }
  0x2a   :  { %p94_p1 = pnand %p92_p0, %p89_p13 }
  0x2c   :  { %97 = shalt.err (!%p94_p1)
}
  0x2d   :  { %42 = dma.vmem_to_hbm [thread:$0]  %s40_s19, 256, %s139_s1, [#allocation4]  }
  0x2e   :  { %100 = dma.done.wait [#allocation4], 256  }
  0x2f   :  { %101 = vsyncadd [#allocation4], 4294967040 }
  0x30   :  { %46 = vsyncpa [#allocation3], 1 }
  0x31   :  { %47 = vsyncpa [#allocation4], 1 }

</bundles_post_ra>
